<compile_context>
chip_gen: v5e
topology: v5e:2x2
jax: 0.10.0
libtpu: 0.0.40
codegen_flags: <defaults>
</compile_context>

<pallas_src>
import math

import jax
import jax.numpy as jnp
from jax.experimental import pallas as pl
from jax.experimental.pallas import tpu as pltpu


def _round_up(x, m):
    return ((x + m - 1) // m) * m


def ae_kernel(x_ref, w1_ref, b1_ref, w2_ref, b2_ref,
              w3_ref, b3_ref, w4_ref, b4_ref, o_ref):
    """Full AE forward on one batch tile (MXU matmuls, f32 accumulation)."""
    cdt = w1_ref.dtype                         # matmul operand dtype (bf16 / f32)
    x = x_ref[...].astype(cdt)                 # cast in-kernel (no HBM copy)

    # encoder: Linear -> ReLU -> Linear -> ReLU   (bias + ReLU kept in f32)
    h = jnp.dot(x, w1_ref[...], preferred_element_type=jnp.float32) + b1_ref[...]
    h = jnp.maximum(h, 0.0).astype(cdt)
    h = jnp.dot(h, w2_ref[...], preferred_element_type=jnp.float32) + b2_ref[...]
    h = jnp.maximum(h, 0.0).astype(cdt)

    # decoder: Linear -> ReLU -> Linear
    h = jnp.dot(h, w3_ref[...], preferred_element_type=jnp.float32) + b3_ref[...]
    h = jnp.maximum(h, 0.0).astype(cdt)
    out = jnp.dot(h, w4_ref[...], preferred_element_type=jnp.float32) + b4_ref[...]

    o_ref[...] = out.astype(o_ref.dtype)


def _num_tensorcores():
    """2 TensorCores per chip on v7x; 1 on v5e/v6e.  Best-effort detection."""
    try:
        kind = jax.devices()[0].device_kind.lower()
        if "v7" in kind:
            return 2
    except Exception:
        pass
    return 1


def _pick_tile_m(batch, row_bytes, vmem_budget_bytes, num_cores):
    """Batch-tile rows from a VMEM budget (streams + live f32 temps)."""
    b_pad8 = _round_up(batch, 8)               # sublane alignment only
    t = vmem_budget_bytes // max(row_bytes, 1)
    t = min(int(t), 8192)
    t = max(128, (t // 128) * 128)
    if num_cores > 1 and batch >= 2 * 128:
        # Give every TensorCore at least one tile of work (v7x only).
        t = min(t, _round_up(-(-batch // num_cores), 128))
    # Never make the tile larger than the (8-row aligned) batch: avoids the
    # 41% dead-row problem of padding the batch up to a big tile.
    return max(8, min(t, b_pad8))


def ae_forward(x, params, *, compute_dtype=jnp.bfloat16, tile_m=None,
               vmem_budget_bytes=8 << 20):
    """AE forward with a 1-D grid over natural-width batch tiles."""
    (w1, b1), (w2, b2), (w3, b3), (w4, b4) = params
    B, column_len = x.shape
    len1, len2 = w1.shape[1], w2.shape[1]
    out_dtype = x.dtype

    # Parameters at natural widths (tiny; VMEM-resident across grid steps).
    w1c = w1.astype(compute_dtype)
    w2c = w2.astype(compute_dtype)
    w3c = w3.astype(compute_dtype)
    w4c = w4.astype(compute_dtype)
    b1c = b1.reshape(1, len1).astype(jnp.float32)
    b2c = b2.reshape(1, len2).astype(jnp.float32)
    b3c = b3.reshape(1, len1).astype(jnp.float32)
    b4c = b4.reshape(1, column_len).astype(jnp.float32)

    if tile_m is None:
        max_width = max(column_len, len1, len2)
        # Double-buffered x / out streams + ~2 live lane-padded f32 temps.
        row_bytes = (2 * column_len * x.dtype.itemsize
                     + 2 * column_len * jnp.dtype(out_dtype).itemsize
                     + 2 * _round_up(max_width, 128) * 4)
        tile_m = _pick_tile_m(B, row_bytes, vmem_budget_bytes,
                              _num_tensorcores())

    B_pad = _round_up(B, tile_m)
    xp = jnp.pad(x, ((0, B_pad - B), (0, 0))) if B_pad != B else x
    grid = (B_pad // tile_m,)

    # Weights/biases: constant index_map keeps them resident every grid step.
    resident = lambda a: pl.BlockSpec(a.shape, lambda i: (0, 0))

    flops = 2 * B_pad * (column_len * len1 + len1 * len2
                         + len2 * len1 + len1 * column_len)
    bytes_accessed = (xp.size * xp.dtype.itemsize
                      + B_pad * column_len * jnp.dtype(out_dtype).itemsize
                      + sum(int(a.size) * a.dtype.itemsize
                            for a in (w1c, w2c, w3c, w4c, b1c, b2c, b3c, b4c)))

    out = pl.pallas_call(
        ae_kernel,
        out_shape=jax.ShapeDtypeStruct((B_pad, column_len), out_dtype),
        grid_spec=pltpu.PrefetchScalarGridSpec(
            num_scalar_prefetch=0,
            grid=grid,
            in_specs=[
                pl.BlockSpec((tile_m, column_len), lambda i: (i, 0)),  # x tile
                resident(w1c), resident(b1c),                          # enc Linear 1
                resident(w2c), resident(b2c),                          # enc Linear 2
                resident(w3c), resident(b3c),                          # dec Linear 1
                resident(w4c), resident(b4c),                          # dec Linear 2
            ],
            out_specs=pl.BlockSpec((tile_m, column_len), lambda i: (i, 0)),
        ),
        compiler_params=pltpu.CompilerParams(
            dimension_semantics=("parallel",)),
        cost_estimate=pl.CostEstimate(
            flops=int(flops),
            transcendentals=0,
            bytes_accessed=int(bytes_accessed)),
    )(xp, w1c, b1c, w2c, b2c, w3c, b3c, w4c, b4c)

    # Strip batch padding only (feature dim is already at natural width).
    return out[:B] if B_pad != B else out


def init_linear(key, fan_in, fan_out, dtype=jnp.float32):
    """PyTorch nn.Linear default init: U(-1/sqrt(fan_in), 1/sqrt(fan_in)).
    Weight returned already transposed to [in, out]."""
    kw, kb = jax.random.split(key)
    bound = 1.0 / math.sqrt(fan_in)
    w = jax.random.uniform(kw, (fan_in, fan_out), dtype, -bound, bound)
    b = jax.random.uniform(kb, (1, fan_out), dtype, -bound, bound)
    return w, b


def ae_reference(x, params):
    """Plain-JAX reference for correctness checking."""
    (w1, b1), (w2, b2), (w3, b3), (w4, b4) = params
    h = jnp.maximum(x @ w1 + b1, 0.0)
    h = jnp.maximum(h @ w2 + b2, 0.0)
    h = jnp.maximum(h @ w3 + b3, 0.0)
    return h @ w4 + b4


if __name__ == "__main__":
    # Shapes consistent with AE(column_len, len1, len2, AE_TYPE); batch chosen
    # deliberately not a multiple of 8/128 to exercise the padding path.
    batch = 300
    column_len, len1, len2 = 16, 32, 8

    key = jax.random.PRNGKey(0)
    kx, k1, k2, k3, k4 = jax.random.split(key, 5)

    x = jax.random.normal(kx, (batch, column_len), jnp.float32)
    params = (
        init_linear(k1, column_len, len1),   # encoder Linear 1
        init_linear(k2, len1, len2),         # encoder Linear 2
        init_linear(k3, len2, len1),         # decoder Linear 1
        init_linear(k4, len1, column_len),   # decoder Linear 2
    )

    ref = ae_reference(x, params)

    # Exact path: f32 MXU operands (tight tolerance vs reference).
    out_f32 = jax.block_until_ready(
        ae_forward(x, params, compute_dtype=jnp.float32))
    assert out_f32.shape == (batch, column_len)
    assert jnp.allclose(out_f32, ref, atol=2e-5, rtol=2e-5), "f32 mismatch vs reference"

    # Performance path: bf16 MXU operands, f32 accumulation / elementwise.
    out_bf16 = jax.block_until_ready(
        ae_forward(x, params, compute_dtype=jnp.bfloat16))
    assert out_bf16.shape == (batch, column_len)
    assert jnp.allclose(out_bf16, ref, atol=1e-1, rtol=1e-1), "bf16 mismatch vs reference"

    print("KERNEL_OK")
</pallas_src>

<mosaic_0001>
module attributes {stable_mosaic.version = 11 : i64} {
  func.func @ae_kernel(%arg0: i32, %arg1: memref<304x16xf32, #tpu.memory_space<vmem>>, %arg2: memref<16x32xf32, #tpu.memory_space<vmem>>, %arg3: memref<1x32xf32, #tpu.memory_space<vmem>>, %arg4: memref<32x8xf32, #tpu.memory_space<vmem>>, %arg5: memref<1x8xf32, #tpu.memory_space<vmem>>, %arg6: memref<8x32xf32, #tpu.memory_space<vmem>>, %arg7: memref<1x32xf32, #tpu.memory_space<vmem>>, %arg8: memref<32x16xf32, #tpu.memory_space<vmem>>, %arg9: memref<1x16xf32, #tpu.memory_space<vmem>>, %arg10: memref<304x16xf32, #tpu.memory_space<vmem>>) attributes {dimension_semantics = [#tpu.dimension_semantics<parallel>], iteration_bounds = array<i64: 1>, scalar_prefetch = 0 : i64, scratch_operands = 0 : i64, tpu.core_type = #tpu.core_type<tc>, window_params = [{transform_indices = @transform_0, window_bounds = array<i64: 304, 16>}, {pipeline_mode = #tpu.pipeline_mode<synchronous>, transform_indices = @transform_1, window_bounds = array<i64: 16, 32>}, {pipeline_mode = #tpu.pipeline_mode<synchronous>, transform_indices = @transform_2, window_bounds = array<i64: 1, 32>}, {pipeline_mode = #tpu.pipeline_mode<synchronous>, transform_indices = @transform_3, window_bounds = array<i64: 32, 8>}, {pipeline_mode = #tpu.pipeline_mode<synchronous>, transform_indices = @transform_4, window_bounds = array<i64: 1, 8>}, {pipeline_mode = #tpu.pipeline_mode<synchronous>, transform_indices = @transform_5, window_bounds = array<i64: 8, 32>}, {pipeline_mode = #tpu.pipeline_mode<synchronous>, transform_indices = @transform_6, window_bounds = array<i64: 1, 32>}, {pipeline_mode = #tpu.pipeline_mode<synchronous>, transform_indices = @transform_7, window_bounds = array<i64: 32, 16>}, {pipeline_mode = #tpu.pipeline_mode<synchronous>, transform_indices = @transform_8, window_bounds = array<i64: 1, 16>}, {transform_indices = @transform_9, window_bounds = array<i64: 304, 16>}]} {
    %c0 = arith.constant 0 : index
    %c0_0 = arith.constant 0 : index
    %0 = vector.load %arg1[%c0, %c0_0] : memref<304x16xf32, #tpu.memory_space<vmem>>, vector<304x16xf32>
    %c0_1 = arith.constant 0 : index
    %c0_2 = arith.constant 0 : index
    %1 = vector.load %arg2[%c0_1, %c0_2] : memref<16x32xf32, #tpu.memory_space<vmem>>, vector<16x32xf32>
    %cst = arith.constant dense<0.000000e+00> : vector<304x32xf32>
    %2 = tpu.matmul %0, %1, %cst {dimension_numbers = #tpu.dot_dimension_numbers<[1], [0], [0], [1], [0, 0, 1, 1], [], []>} : vector<304x16xf32>, vector<16x32xf32>, vector<304x32xf32> -> vector<304x32xf32>
    %c0_3 = arith.constant 0 : index
    %c0_4 = arith.constant 0 : index
    %3 = vector.load %arg3[%c0_3, %c0_4] : memref<1x32xf32, #tpu.memory_space<vmem>>, vector<1x32xf32>
    %4 = vector.broadcast %3 : vector<1x32xf32> to vector<304x32xf32>
    %5 = arith.addf %2, %4 : vector<304x32xf32>
    %cst_5 = arith.constant 0.000000e+00 : f32
    %6 = vector.broadcast %cst_5 : f32 to vector<304x32xf32>
    %7 = arith.maximumf %5, %6 : vector<304x32xf32>
    %c0_6 = arith.constant 0 : index
    %c0_7 = arith.constant 0 : index
    %8 = vector.load %arg4[%c0_6, %c0_7] : memref<32x8xf32, #tpu.memory_space<vmem>>, vector<32x8xf32>
    %cst_8 = arith.constant dense<0.000000e+00> : vector<304x8xf32>
    %9 = tpu.matmul %7, %8, %cst_8 {dimension_numbers = #tpu.dot_dimension_numbers<[1], [0], [0], [1], [0, 0, 1, 1], [], []>} : vector<304x32xf32>, vector<32x8xf32>, vector<304x8xf32> -> vector<304x8xf32>
    %c0_9 = arith.constant 0 : index
    %c0_10 = arith.constant 0 : index
    %10 = vector.load %arg5[%c0_9, %c0_10] : memref<1x8xf32, #tpu.memory_space<vmem>>, vector<1x8xf32>
    %11 = vector.broadcast %10 : vector<1x8xf32> to vector<304x8xf32>
    %12 = arith.addf %9, %11 : vector<304x8xf32>
    %cst_11 = arith.constant 0.000000e+00 : f32
    %13 = vector.broadcast %cst_11 : f32 to vector<304x8xf32>
    %14 = arith.maximumf %12, %13 : vector<304x8xf32>
    %c0_12 = arith.constant 0 : index
    %c0_13 = arith.constant 0 : index
    %15 = vector.load %arg6[%c0_12, %c0_13] : memref<8x32xf32, #tpu.memory_space<vmem>>, vector<8x32xf32>
    %cst_14 = arith.constant dense<0.000000e+00> : vector<304x32xf32>
    %16 = tpu.matmul %14, %15, %cst_14 {dimension_numbers = #tpu.dot_dimension_numbers<[1], [0], [0], [1], [0, 0, 1, 1], [], []>} : vector<304x8xf32>, vector<8x32xf32>, vector<304x32xf32> -> vector<304x32xf32>
    %c0_15 = arith.constant 0 : index
    %c0_16 = arith.constant 0 : index
    %17 = vector.load %arg7[%c0_15, %c0_16] : memref<1x32xf32, #tpu.memory_space<vmem>>, vector<1x32xf32>
    %18 = vector.broadcast %17 : vector<1x32xf32> to vector<304x32xf32>
    %19 = arith.addf %16, %18 : vector<304x32xf32>
    %cst_17 = arith.constant 0.000000e+00 : f32
    %20 = vector.broadcast %cst_17 : f32 to vector<304x32xf32>
    %21 = arith.maximumf %19, %20 : vector<304x32xf32>
    %c0_18 = arith.constant 0 : index
    %c0_19 = arith.constant 0 : index
    %22 = vector.load %arg8[%c0_18, %c0_19] : memref<32x16xf32, #tpu.memory_space<vmem>>, vector<32x16xf32>
    %cst_20 = arith.constant dense<0.000000e+00> : vector<304x16xf32>
    %23 = tpu.matmul %21, %22, %cst_20 {dimension_numbers = #tpu.dot_dimension_numbers<[1], [0], [0], [1], [0, 0, 1, 1], [], []>} : vector<304x32xf32>, vector<32x16xf32>, vector<304x16xf32> -> vector<304x16xf32>
    %c0_21 = arith.constant 0 : index
    %c0_22 = arith.constant 0 : index
    %24 = vector.load %arg9[%c0_21, %c0_22] : memref<1x16xf32, #tpu.memory_space<vmem>>, vector<1x16xf32>
    %25 = vector.broadcast %24 : vector<1x16xf32> to vector<304x16xf32>
    %26 = arith.addf %23, %25 : vector<304x16xf32>
    %c0_23 = arith.constant 0 : index
    %c0_24 = arith.constant 0 : index
    %27 = vector.load %arg10[%c0_23, %c0_24] : memref<304x16xf32, #tpu.memory_space<vmem>>, vector<304x16xf32>
    tpu.vector_store %arg10[%c0_23, %c0_24], %26 {strides = array<i32>} : memref<304x16xf32, #tpu.memory_space<vmem>>, vector<304x16xf32>,
    return
  }
  func.func @transform_0(%arg0: i32) -> (i32, i32) {
    %c0_i32 = arith.constant 0 : i32
    %c0_i32_0 = arith.constant 0 : i32
    return %arg0, %c0_i32 : i32, i32
  }
  func.func @transform_1(%arg0: i32) -> (i32, i32) {
    %c0_i32 = arith.constant 0 : i32
    %c0_i32_0 = arith.constant 0 : i32
    %c0_i32_1 = arith.constant 0 : i32
    return %c0_i32, %c0_i32_0 : i32, i32
  }
  func.func @transform_2(%arg0: i32) -> (i32, i32) {
    %c0_i32 = arith.constant 0 : i32
    %c0_i32_0 = arith.constant 0 : i32
    %c0_i32_1 = arith.constant 0 : i32
    return %c0_i32, %c0_i32_0 : i32, i32
  }
  func.func @transform_3(%arg0: i32) -> (i32, i32) {
    %c0_i32 = arith.constant 0 : i32
    %c0_i32_0 = arith.constant 0 : i32
    %c0_i32_1 = arith.constant 0 : i32
    return %c0_i32, %c0_i32_0 : i32, i32
  }
  func.func @transform_4(%arg0: i32) -> (i32, i32) {
    %c0_i32 = arith.constant 0 : i32
    %c0_i32_0 = arith.constant 0 : i32
    %c0_i32_1 = arith.constant 0 : i32
    return %c0_i32, %c0_i32_0 : i32, i32
  }
  func.func @transform_5(%arg0: i32) -> (i32, i32) {
    %c0_i32 = arith.constant 0 : i32
    %c0_i32_0 = arith.constant 0 : i32
    %c0_i32_1 = arith.constant 0 : i32
    return %c0_i32, %c0_i32_0 : i32, i32
  }
  func.func @transform_6(%arg0: i32) -> (i32, i32) {
    %c0_i32 = arith.constant 0 : i32
    %c0_i32_0 = arith.constant 0 : i32
    %c0_i32_1 = arith.constant 0 : i32
    return %c0_i32, %c0_i32_0 : i32, i32
  }
  func.func @transform_7(%arg0: i32) -> (i32, i32) {
    %c0_i32 = arith.constant 0 : i32
    %c0_i32_0 = arith.constant 0 : i32
    %c0_i32_1 = arith.constant 0 : i32
    return %c0_i32, %c0_i32_0 : i32, i32
  }
  func.func @transform_8(%arg0: i32) -> (i32, i32) {
    %c0_i32 = arith.constant 0 : i32
    %c0_i32_0 = arith.constant 0 : i32
    %c0_i32_1 = arith.constant 0 : i32
    return %c0_i32, %c0_i32_0 : i32, i32
  }
  func.func @transform_9(%arg0: i32) -> (i32, i32) {
    %c0_i32 = arith.constant 0 : i32
    %c0_i32_0 = arith.constant 0 : i32
    return %arg0, %c0_i32 : i32, i32
  }
}

</mosaic_0001>

<bundles_post_ra>
// kernel: tpu_custom_call.1
= control target key start
LH: loop header
LB: loop body
LE: loop exit
PB: predicated region body
PF: predicated region fallthrough
CT: control target
= control target key end

     0   :  { %vm76_vm0 = vcmask 130048   ;;  %vm368_vm1 = vcmask 261120   ;;  %vm657_vm2 = vcmask 64512   ;;  %s2065_s1 = inlined_call_operand.vmem [shape: f32[16,32], index: 1, kind: input, shape index: {}]   ;;  %s2066_s0 = inlined_call_operand.vmem [shape: f32[304,16], index: 0, kind: input, shape index: {}]   ;;  %s2067_s2 = inlined_call_operand.vmem [shape: f32[1,32], index: 2, kind: input, shape index: {}]   ;;  %s2068_s3 = inlined_call_operand.vmem [shape: f32[32,8], index: 3, kind: input, shape index: {}]   ;;  %s2069_s4 = inlined_call_operand.vmem [shape: f32[1,8], index: 4, kind: input, shape index: {}]   ;;  %s2070_s5 = inlined_call_operand.vmem [shape: f32[8,32], index: 5, kind: input, shape index: {}]   ;;  %s2071_s6 = inlined_call_operand.vmem [shape: f32[1,32], index: 6, kind: input, shape index: {}]   ;;  %s2072_s7 = inlined_call_operand.vmem [shape: f32[32,16], index: 7, kind: input, shape index: {}]   ;;  %s2073_s8 = inlined_call_operand.vmem [shape: f32[1,16], index: 8, kind: input, shape index: {}]   ;;  %s2074_s9 = inlined_call_operand.vmem [shape: f32[304,16], index: 9, kind: output, shape index: {}]  }
   0x1   :  { %v71_v0 = vld [vmem:[%s2065_s1 + $0x8] sm:$0xff]  ;;  %v70_v1 = vld [vmem:[%s2065_s1] sm:$0xff]  ;;  %v34_v4 = vld [vmem:[%s2066_s0 + $0x10] sm:$0xff] }
   0x2   :  { %205 = vmatpush.msra.mxu0 %v71_v0  ;;  %v32_v2 = vld [vmem:[%s2066_s0] sm:$0xff]  ;;  %v33_v3 = vld [vmem:[%s2066_s0 + $0x8] sm:$0xff]  ;;  %v35_v5 = vld [vmem:[%s2066_s0 + $0x18] sm:$0xff] }
   0x3   :  { %v36_v6 = vld [vmem:[%s2066_s0 + $0x20] sm:$0xff]  ;;  %v37_v7 = vld [vmem:[%s2066_s0 + $0x28] sm:$0xff]  ;;  %v38_v8 = vld [vmem:[%s2066_s0 + $0x30] sm:$0xff] }
   0x4   :  { %206 = vmatpush.msra.mxu0 %v70_v1  ;;  %v39_v9 = vld [vmem:[%s2066_s0 + $0x38] sm:$0xff]  ;;  %v40_v10 = vld [vmem:[%s2066_s0 + $0x40] sm:$0xff]  ;;  %v41_v11 = vld [vmem:[%s2066_s0 + $0x48] sm:$0xff] }
   0x5   :  { %1236 = vmatmul.msk.f32.vlgmr.msra.gmra.mxu0 %vm76_vm0, %v32_v2  ;;  %v42_v12 = vld [vmem:[%s2066_s0 + $0x50] sm:$0xff]  ;;  %v43_v13 = vld [vmem:[%s2066_s0 + $0x58] sm:$0xff]  ;;  %v44_v16 = vld [vmem:[%s2066_s0 + $0x60] sm:$0xff] }
   0x6   :  { %v363_v14 = vld [vmem:[%s2068_s3 + $0x18] sm:$0xff]  ;;  %v362_v15 = vld [vmem:[%s2068_s3 + $0x10] sm:$0xff]  ;;  %v361_v17 = vld [vmem:[%s2068_s3 + $0x8] sm:$0xff] }
   0x7   :  { %495 = vmatpush.msra.mxu1 %v363_v14  ;;  %v360_v18 = vld [vmem:[%s2068_s3] sm:$0xff]  ;;  %v45_v19 = vld [vmem:[%s2066_s0 + $0x68] sm:$0xff]  ;;  %v46_v20 = vld [vmem:[%s2066_s0 + $0x70] sm:$0xff] }
   0x8   :  { %v47_v21 = vld [vmem:[%s2066_s0 + $0x78] sm:$0xff]  ;;  %v1527_v22 = vld [vmem:[%s2067_s2] ss:$0 sm:$0xff]  ;;  %v49_v28 = vld [vmem:[%s2066_s0 + $0x88] sm:$0xff] }
   0x9   :  { %496 = vmatpush.msra.mxu1 %v362_v15  ;;  %v48_v24 = vld [vmem:[%s2066_s0 + $0x80] sm:$0xff]  ;;  %v50_v32 = vld [vmem:[%s2066_s0 + $0x90] sm:$0xff]  ;;  %v51_v36 = vld [vmem:[%s2066_s0 + $0x98] sm:$0xff] }
   0xa   :  { %v52_v40 = vld [vmem:[%s2066_s0 + $0xa0] sm:$0xff]  ;;  %v53_v44 = vld [vmem:[%s2066_s0 + $0xa8] sm:$0xff]  ;;  %v54_v48 = vld [vmem:[%s2066_s0 + $0xb0] sm:$0xff] }
   0xb   :  { %497 = vmatpush.msra.mxu1 %v361_v17  ;;  %v55_v52 = vld [vmem:[%s2066_s0 + $0xb8] sm:$0xff]  ;;  %v56_v56 = vld [vmem:[%s2066_s0 + $0xc0] sm:$0xff]  ;;  %v57_v60 = vld [vmem:[%s2066_s0 + $0xc8] sm:$0xff] }
   0xc   :  { %v58_v0 = vld [vmem:[%s2066_s0 + $0xd0] sm:$0xff] }
   0xd   :  { %1237 = vmatmul.msk.f32.gmra.mxu0 %vm76_vm0, %v33_v3  ;;  %498 = vmatpush.msra.mxu1 %v360_v18  ;;  %v62_v17 = vld [vmem:[%s2066_s0 + $0xf0] sm:$0xff] }
  0x15   :  { %1238 = vmatmul.msk.f32.gmra.mxu0 %vm76_vm0, %v34_v4  ;;  %v59_v4 = vld [vmem:[%s2066_s0 + $0xd8] sm:$0xff] }
  0x1d   :  { %1239 = vmatmul.msk.f32.gmra.mxu0 %vm76_vm0, %v35_v5 }
  0x25   :  { %1240 = vmatmul.msk.f32.gmra.mxu0 %vm76_vm0, %v36_v6 }
  0x2d   :  { %1241 = vmatmul.msk.f32.gmra.mxu0 %vm76_vm0, %v37_v7 }
  0x35   :  { %1242 = vmatmul.msk.f32.gmra.mxu0 %vm76_vm0, %v38_v8  ;;  %v60_v8 = vld [vmem:[%s2066_s0 + $0xe0] sm:$0xff] }
  0x3d   :  { %1243 = vmatmul.msk.f32.gmra.mxu0 %vm76_vm0, %v39_v9 }
  0x45   :  { %1244 = vmatmul.msk.f32.gmra.mxu0 %vm76_vm0, %v40_v10 }
  0x4d   :  { %1245 = vmatmul.msk.f32.gmra.mxu0 %vm76_vm0, %v41_v11  ;;  %v652_v11 = vld [vmem:[%s2070_s5] sm:$0xff] }
  0x4e   :  { %787 = vmatpush.msra.mxu2 %v652_v11 }
  0x55   :  { %1246 = vmatmul.msk.f32.gmra.mxu0 %vm76_vm0, %v42_v12 }
  0x5d   :  { %1247 = vmatmul.msk.f32.gmra.mxu0 %vm76_vm0, %v43_v13  ;;  %v61_v13 = vld [vmem:[%s2066_s0 + $0xe8] sm:$0xff] }
  0x65   :  { %1248 = vmatmul.msk.f32.gmra.mxu0 %vm76_vm0, %v44_v16 }
  0x6d   :  { %1249 = vmatmul.msk.f32.gmra.mxu0 %vm76_vm0, %v45_v19 }
  0x75   :  { %1250 = vmatmul.msk.f32.gmra.mxu0 %vm76_vm0, %v46_v20 }
  0x7d   :  { %1251 = vmatmul.msk.f32.gmra.mxu0 %vm76_vm0, %v47_v21  ;;  %v63_v21 = vld [vmem:[%s2066_s0 + $0xf8] sm:$0xff] }
  0x82   :  { %v208_v23 = vpop.f32.mrf.mxu0 }
  0x83   :  { %v209_v25 = vadd.f32 %v1527_v22, %v208_v23 }
  0x85   :  { %v322_v26 = vmax.f32 %v209_v25, 0.0  ;;  %1252 = vmatmul.msk.f32.gmra.mxu0 %vm76_vm0, %v48_v24  ;;  %v1631_v25 = vld [vmem:[%s2069_s4] ss:$0 sm:$0xff] }
  0x87   :  { %1274 = vmatmul.msk.f32.vlgmr.msra.gmra.mxu1 %vm368_vm1, %v322_v26 }
  0x8a   :  { %v211_v27 = vpop.f32.mrf.mxu0 }
  0x8b   :  { %v212_v29 = vadd.f32 %v1527_v22, %v211_v27  ;;  %v64_v27 = vld [vmem:[%s2066_s0 + $0x100] sm:$0xff] }
  0x8d   :  { %v323_v30 = vmax.f32 %v212_v29, 0.0  ;;  %1253 = vmatmul.msk.f32.gmra.mxu0 %vm76_vm0, %v49_v28 }
  0x8f   :  { %1275 = vmatmul.msk.f32.gmra.mxu1 %vm368_vm1, %v323_v30 }
  0x92   :  { %v214_v31 = vpop.f32.mrf.mxu0 }
  0x93   :  { %v215_v33 = vadd.f32 %v1527_v22, %v214_v31 }
  0x95   :  { %v324_v34 = vmax.f32 %v215_v33, 0.0  ;;  %1254 = vmatmul.msk.f32.gmra.mxu0 %vm76_vm0, %v50_v32 }
  0x97   :  { %1276 = vmatmul.msk.f32.gmra.mxu1 %vm368_vm1, %v324_v34  ;;  %v65_v34 = vld [vmem:[%s2066_s0 + $0x108] sm:$0xff] }
  0x9a   :  { %v217_v35 = vpop.f32.mrf.mxu0 }
  0x9b   :  { %v218_v37 = vadd.f32 %v1527_v22, %v217_v35 }
  0x9d   :  { %v325_v38 = vmax.f32 %v218_v37, 0.0  ;;  %1255 = vmatmul.msk.f32.gmra.mxu0 %vm76_vm0, %v51_v36 }
  0x9f   :  { %1277 = vmatmul.msk.f32.gmra.mxu1 %vm368_vm1, %v325_v38 }
  0xa2   :  { %v220_v39 = vpop.f32.mrf.mxu0 }
  0xa3   :  { %v221_v41 = vadd.f32 %v1527_v22, %v220_v39 }
  0xa5   :  { %v326_v42 = vmax.f32 %v221_v41, 0.0  ;;  %1256 = vmatmul.msk.f32.gmra.mxu0 %vm76_vm0, %v52_v40  ;;  %v66_v41 = vld [vmem:[%s2066_s0 + $0x110] sm:$0xff] }
  0xa7   :  { %1278 = vmatmul.msk.f32.gmra.mxu1 %vm368_vm1, %v326_v42 }
  0xaa   :  { %v223_v43 = vpop.f32.mrf.mxu0 }
  0xab   :  { %v224_v45 = vadd.f32 %v1527_v22, %v223_v43 }
  0xad   :  { %v327_v46 = vmax.f32 %v224_v45, 0.0  ;;  %1257 = vmatmul.msk.f32.gmra.mxu0 %vm76_vm0, %v53_v44 }
  0xaf   :  { %1279 = vmatmul.msk.f32.gmra.mxu1 %vm368_vm1, %v327_v46 }
  0xb2   :  { %v226_v47 = vpop.f32.mrf.mxu0 }
  0xb3   :  { %v227_v49 = vadd.f32 %v1527_v22, %v226_v47 }
  0xb5   :  { %v328_v50 = vmax.f32 %v227_v49, 0.0  ;;  %1258 = vmatmul.msk.f32.gmra.mxu0 %vm76_vm0, %v54_v48  ;;  %v67_v48 = vld [vmem:[%s2066_s0 + $0x118] sm:$0xff] }
  0xb7   :  { %1280 = vmatmul.msk.f32.gmra.mxu1 %vm368_vm1, %v328_v50 }
  0xba   :  { %v229_v51 = vpop.f32.mrf.mxu0 }
  0xbb   :  { %v230_v53 = vadd.f32 %v1527_v22, %v229_v51 }
  0xbd   :  { %v329_v54 = vmax.f32 %v230_v53, 0.0  ;;  %1259 = vmatmul.msk.f32.gmra.mxu0 %vm76_vm0, %v55_v52 }
  0xbf   :  { %1281 = vmatmul.msk.f32.gmra.mxu1 %vm368_vm1, %v329_v54 }
  0xc2   :  { %v232_v55 = vpop.f32.mrf.mxu0 }
  0xc3   :  { %v233_v57 = vadd.f32 %v1527_v22, %v232_v55  ;;  %v68_v55 = vld [vmem:[%s2066_s0 + $0x120] sm:$0xff] }
  0xc5   :  { %v330_v58 = vmax.f32 %v233_v57, 0.0  ;;  %1260 = vmatmul.msk.f32.gmra.mxu0 %vm76_vm0, %v56_v56 }
  0xc7   :  { %1282 = vmatmul.msk.f32.gmra.mxu1 %vm368_vm1, %v330_v58 }
  0xca   :  { %v235_v59 = vpop.f32.mrf.mxu0 }
  0xcb   :  { %v236_v61 = vadd.f32 %v1527_v22, %v235_v59 }
  0xcd   :  { %v331_v62 = vmax.f32 %v236_v61, 0.0  ;;  %1261 = vmatmul.msk.f32.gmra.mxu0 %vm76_vm0, %v57_v60 }
  0xcf   :  { %1283 = vmatmul.msk.f32.gmra.mxu1 %vm368_vm1, %v331_v62  ;;  %v69_v62 = vld [vmem:[%s2066_s0 + $0x128] sm:$0xff] }
  0xd2   :  { %v238_v63 = vpop.f32.mrf.mxu0 }
  0xd3   :  { %v239_v1 = vadd.f32 %v1527_v22, %v238_v63 }
  0xd5   :  { %v332_v2 = vmax.f32 %v239_v1, 0.0  ;;  %1262 = vmatmul.msk.f32.gmra.mxu0 %vm76_vm0, %v58_v0 }
  0xd7   :  { %1284 = vmatmul.msk.f32.gmra.mxu1 %vm368_vm1, %v332_v2 }
  0xda   :  { %v241_v3 = vpop.f32.mrf.mxu0 }
  0xdb   :  { %v242_v5 = vadd.f32 %v1527_v22, %v241_v3 }
  0xdd   :  { %v333_v6 = vmax.f32 %v242_v5, 0.0  ;;  %1263 = vmatmul.msk.f32.gmra.mxu0 %vm76_vm0, %v59_v4 }
  0xdf   :  { %1285 = vmatmul.msk.f32.gmra.mxu1 %vm368_vm1, %v333_v6 }
  0xe2   :  { %v244_v7 = vpop.f32.mrf.mxu0 }
  0xe3   :  { %v245_v9 = vadd.f32 %v1527_v22, %v244_v7 }
  0xe5   :  { %v334_v10 = vmax.f32 %v245_v9, 0.0  ;;  %1264 = vmatmul.msk.f32.gmra.mxu0 %vm76_vm0, %v60_v8 }
  0xe7   :  { %1286 = vmatmul.msk.f32.gmra.mxu1 %vm368_vm1, %v334_v10 }
  0xea   :  { %v247_v12 = vpop.f32.mrf.mxu0 }
  0xeb   :  { %v248_v14 = vadd.f32 %v1527_v22, %v247_v12 }
  0xed   :  { %v335_v15 = vmax.f32 %v248_v14, 0.0  ;;  %1265 = vmatmul.msk.f32.gmra.mxu0 %vm76_vm0, %v61_v13 }
  0xef   :  { %1287 = vmatmul.msk.f32.gmra.mxu1 %vm368_vm1, %v335_v15 }
  0xf2   :  { %v250_v16 = vpop.f32.mrf.mxu0 }
  0xf3   :  { %v251_v18 = vadd.f32 %v1527_v22, %v250_v16 }
  0xf5   :  { %v336_v19 = vmax.f32 %v251_v18, 0.0  ;;  %1266 = vmatmul.msk.f32.gmra.mxu0 %vm76_vm0, %v62_v17 }
  0xf7   :  { %1288 = vmatmul.msk.f32.gmra.mxu1 %vm368_vm1, %v336_v19 }
  0xfa   :  { %v253_v20 = vpop.f32.mrf.mxu0 }
  0xfb   :  { %v254_v23 = vadd.f32 %v1527_v22, %v253_v20 }
  0xfd   :  { %v337_v24 = vmax.f32 %v254_v23, 0.0  ;;  %1267 = vmatmul.msk.f32.gmra.mxu0 %vm76_vm0, %v63_v21 }
  0xff   :  { %1289 = vmatmul.msk.f32.gmra.mxu1 %vm368_vm1, %v337_v24 }
 0x102   :  { %v256_v26 = vpop.f32.mrf.mxu0 }
 0x103   :  { %v257_v28 = vadd.f32 %v1527_v22, %v256_v26 }
 0x104   :  { %v500_v29 = vpop.f32.mrf.mxu1 }
 0x105   :  { %v338_v30 = vmax.f32 %v257_v28, 0.0  ;;  %v501_v31 = vadd.f32 %v1631_v25, %v500_v29  ;;  %1268 = vmatmul.msk.f32.gmra.mxu0 %vm76_vm0, %v64_v27 }
 0x107   :  { %v614_v32 = vmax.f32 %v501_v31, 0.0  ;;  %1290 = vmatmul.msk.f32.gmra.mxu1 %vm368_vm1, %v338_v30 }
 0x109   :  { %1312 = vmatmul.msk.f32.vlgmr.msra.gmra.mxu2 %vm657_vm2, %v614_v32 }
 0x10a   :  { %v259_v33 = vpop.f32.mrf.mxu0 }
 0x10b   :  { %v260_v35 = vadd.f32 %v1527_v22, %v259_v33 }
 0x10c   :  { %v503_v36 = vpop.f32.mrf.mxu1 }
 0x10d   :  { %v339_v37 = vmax.f32 %v260_v35, 0.0  ;;  %v504_v38 = vadd.f32 %v1631_v25, %v503_v36  ;;  %1269 = vmatmul.msk.f32.gmra.mxu0 %vm76_vm0, %v65_v34 }
 0x10f   :  { %v615_v39 = vmax.f32 %v504_v38, 0.0  ;;  %1291 = vmatmul.msk.f32.gmra.mxu1 %vm368_vm1, %v339_v37 }
 0x111   :  { %1313 = vmatmul.msk.f32.gmra.mxu2 %vm657_vm2, %v615_v39 }
 0x112   :  { %v262_v40 = vpop.f32.mrf.mxu0 }
 0x113   :  { %v263_v42 = vadd.f32 %v1527_v22, %v262_v40 }
 0x114   :  { %v506_v43 = vpop.f32.mrf.mxu1 }
 0x115   :  { %v340_v44 = vmax.f32 %v263_v42, 0.0  ;;  %v507_v45 = vadd.f32 %v1631_v25, %v506_v43  ;;  %1270 = vmatmul.msk.f32.gmra.mxu0 %vm76_vm0, %v66_v41 }
 0x117   :  { %v616_v46 = vmax.f32 %v507_v45, 0.0  ;;  %1292 = vmatmul.msk.f32.gmra.mxu1 %vm368_vm1, %v340_v44 }
 0x119   :  { %1314 = vmatmul.msk.f32.gmra.mxu2 %vm657_vm2, %v616_v46 }
 0x11a   :  { %v265_v47 = vpop.f32.mrf.mxu0 }
 0x11b   :  { %v266_v49 = vadd.f32 %v1527_v22, %v265_v47 }
 0x11c   :  { %v509_v50 = vpop.f32.mrf.mxu1 }
 0x11d   :  { %v341_v51 = vmax.f32 %v266_v49, 0.0  ;;  %v510_v52 = vadd.f32 %v1631_v25, %v509_v50  ;;  %1271 = vmatmul.msk.f32.gmra.mxu0 %vm76_vm0, %v67_v48  ;;  %v944_v48 = vld [vmem:[%s2072_s7 + $0x18] sm:$0xff] }
 0x11e   :  { %1075 = vmatpush.msra.mxu3 %v944_v48 }
 0x11f   :  { %v617_v53 = vmax.f32 %v510_v52, 0.0  ;;  %1293 = vmatmul.msk.f32.gmra.mxu1 %vm368_vm1, %v341_v51  ;;  %v943_v51 = vld [vmem:[%s2072_s7 + $0x10] sm:$0xff] }
 0x120   :  { %1076 = vmatpush.msra.mxu3 %v943_v51 }
 0x121   :  { %1315 = vmatmul.msk.f32.gmra.mxu2 %vm657_vm2, %v617_v53 }
 0x122   :  { %v268_v54 = vpop.f32.mrf.mxu0 }
 0x123   :  { %v269_v56 = vadd.f32 %v1527_v22, %v268_v54 }
 0x124   :  { %v512_v57 = vpop.f32.mrf.mxu1 }
 0x125   :  { %v342_v58 = vmax.f32 %v269_v56, 0.0  ;;  %v513_v59 = vadd.f32 %v1631_v25, %v512_v57  ;;  %1272 = vmatmul.msk.f32.gmra.mxu0 %vm76_vm0, %v68_v55  ;;  %v942_v55 = vld [vmem:[%s2072_s7 + $0x8] sm:$0xff]  ;;  %v941_v57 = vld [vmem:[%s2072_s7] sm:$0xff] }
 0x126   :  { %1077 = vmatpush.msra.mxu3 %v942_v55 }
 0x127   :  { %v618_v60 = vmax.f32 %v513_v59, 0.0  ;;  %1294 = vmatmul.msk.f32.gmra.mxu1 %vm368_vm1, %v342_v58 }
 0x128   :  { %1078 = vmatpush.msra.mxu3 %v941_v57 }
 0x129   :  { %1316 = vmatmul.msk.f32.gmra.mxu2 %vm657_vm2, %v618_v60 }
 0x12a   :  { %v271_v61 = vpop.f32.mrf.mxu0 }
 0x12b   :  { %v272_v63 = vadd.f32 %v1527_v22, %v271_v61 }
 0x12c   :  { %v515_v0 = vpop.f32.mrf.mxu1 }
 0x12d   :  { %v343_v1 = vmax.f32 %v272_v63, 0.0  ;;  %v516_v2 = vadd.f32 %v1631_v25, %v515_v0  ;;  %1273 = vmatmul.msk.f32.gmra.mxu0 %vm76_vm0, %v69_v62 }
 0x12f   :  { %v619_v3 = vmax.f32 %v516_v2, 0.0  ;;  %1295 = vmatmul.msk.f32.gmra.mxu1 %vm368_vm1, %v343_v1 }
 0x131   :  { %1317 = vmatmul.msk.f32.gmra.mxu2 %vm657_vm2, %v619_v3 }
 0x132   :  { %v274_v4 = vpop.f32.mrf.mxu0 }
 0x133   :  { %v275_v5 = vadd.f32 %v1527_v22, %v274_v4 }
 0x134   :  { %v518_v6 = vpop.f32.mrf.mxu1 }
 0x135   :  { %v344_v7 = vmax.f32 %v275_v5, 0.0  ;;  %v519_v8 = vadd.f32 %v1631_v25, %v518_v6 }
 0x137   :  { %v620_v9 = vmax.f32 %v519_v8, 0.0  ;;  %1296 = vmatmul.msk.f32.gmra.mxu1 %vm368_vm1, %v344_v7 }
 0x139   :  { %1318 = vmatmul.msk.f32.gmra.mxu2 %vm657_vm2, %v620_v9 }
 0x13a   :  { %v277_v10 = vpop.f32.mrf.mxu0 }
 0x13b   :  { %v278_v11 = vadd.f32 %v1527_v22, %v277_v10 }
 0x13c   :  { %v521_v12 = vpop.f32.mrf.mxu1 }
 0x13d   :  { %v345_v13 = vmax.f32 %v278_v11, 0.0  ;;  %v522_v14 = vadd.f32 %v1631_v25, %v521_v12  ;;  %v1740_v12 = vld [vmem:[%s2071_s6] ss:$0 sm:$0xff] }
 0x13f   :  { %v621_v15 = vmax.f32 %v522_v14, 0.0  ;;  %1297 = vmatmul.msk.f32.gmra.mxu1 %vm368_vm1, %v345_v13 }
 0x141   :  { %1319 = vmatmul.msk.f32.gmra.mxu2 %vm657_vm2, %v621_v15 }
 0x142   :  { %v280_v16 = vpop.f32.mrf.mxu0 }
 0x143   :  { %v281_v17 = vadd.f32 %v1527_v22, %v280_v16 }
 0x144   :  { %v524_v18 = vpop.f32.mrf.mxu1 }
 0x145   :  { %v346_v19 = vmax.f32 %v281_v17, 0.0  ;;  %v525_v20 = vadd.f32 %v1631_v25, %v524_v18 }
 0x147   :  { %v622_v21 = vmax.f32 %v525_v20, 0.0  ;;  %1298 = vmatmul.msk.f32.gmra.mxu1 %vm368_vm1, %v346_v19 }
 0x149   :  { %1320 = vmatmul.msk.f32.gmra.mxu2 %vm657_vm2, %v622_v21 }
 0x14a   :  { %v283_v23 = vpop.f32.mrf.mxu0 }
 0x14b   :  { %v284_v24 = vadd.f32 %v1527_v22, %v283_v23 }
 0x14c   :  { %v527_v26 = vpop.f32.mrf.mxu1 }
 0x14d   :  { %v347_v27 = vmax.f32 %v284_v24, 0.0  ;;  %v528_v28 = vadd.f32 %v1631_v25, %v527_v26 }
 0x14f   :  { %v623_v29 = vmax.f32 %v528_v28, 0.0  ;;  %1299 = vmatmul.msk.f32.gmra.mxu1 %vm368_vm1, %v347_v27 }
 0x151   :  { %1321 = vmatmul.msk.f32.gmra.mxu2 %vm657_vm2, %v623_v29 }
 0x152   :  { %v286_v30 = vpop.f32.mrf.mxu0 }
 0x153   :  { %v287_v31 = vadd.f32 %v1527_v22, %v286_v30 }
 0x154   :  { %v530_v32 = vpop.f32.mrf.mxu1 }
 0x155   :  { %v348_v33 = vmax.f32 %v287_v31, 0.0  ;;  %v531_v34 = vadd.f32 %v1631_v25, %v530_v32 }
 0x157   :  { %v624_v35 = vmax.f32 %v531_v34, 0.0  ;;  %1300 = vmatmul.msk.f32.gmra.mxu1 %vm368_vm1, %v348_v33 }
 0x159   :  { %1322 = vmatmul.msk.f32.gmra.mxu2 %vm657_vm2, %v624_v35 }
 0x15a   :  { %v289_v36 = vpop.f32.mrf.mxu0 }
 0x15b   :  { %v290_v37 = vadd.f32 %v1527_v22, %v289_v36 }
 0x15c   :  { %v533_v38 = vpop.f32.mrf.mxu1 }
 0x15d   :  { %v349_v39 = vmax.f32 %v290_v37, 0.0  ;;  %v534_v40 = vadd.f32 %v1631_v25, %v533_v38 }
 0x15f   :  { %v625_v41 = vmax.f32 %v534_v40, 0.0  ;;  %1301 = vmatmul.msk.f32.gmra.mxu1 %vm368_vm1, %v349_v39 }
 0x161   :  { %1323 = vmatmul.msk.f32.gmra.mxu2 %vm657_vm2, %v625_v41 }
 0x162   :  { %v292_v42 = vpop.f32.mrf.mxu0 }
 0x163   :  { %v293_v43 = vadd.f32 %v1527_v22, %v292_v42 }
 0x164   :  { %v536_v44 = vpop.f32.mrf.mxu1 }
 0x165   :  { %v350_v45 = vmax.f32 %v293_v43, 0.0  ;;  %v537_v46 = vadd.f32 %v1631_v25, %v536_v44 }
 0x167   :  { %v626_v47 = vmax.f32 %v537_v46, 0.0  ;;  %1302 = vmatmul.msk.f32.gmra.mxu1 %vm368_vm1, %v350_v45 }
 0x169   :  { %1324 = vmatmul.msk.f32.gmra.mxu2 %vm657_vm2, %v626_v47 }
 0x16a   :  { %v295_v49 = vpop.f32.mrf.mxu0 }
 0x16b   :  { %v296_v50 = vadd.f32 %v1527_v22, %v295_v49 }
 0x16c   :  { %v539_v52 = vpop.f32.mrf.mxu1 }
 0x16d   :  { %v351_v53 = vmax.f32 %v296_v50, 0.0  ;;  %v540_v54 = vadd.f32 %v1631_v25, %v539_v52 }
 0x16f   :  { %v627_v56 = vmax.f32 %v540_v54, 0.0  ;;  %1303 = vmatmul.msk.f32.gmra.mxu1 %vm368_vm1, %v351_v53 }
 0x171   :  { %1325 = vmatmul.msk.f32.gmra.mxu2 %vm657_vm2, %v627_v56 }
 0x172   :  { %v298_v58 = vpop.f32.mrf.mxu0 }
 0x173   :  { %v299_v59 = vadd.f32 %v1527_v22, %v298_v58 }
 0x174   :  { %v542_v60 = vpop.f32.mrf.mxu1 }
 0x175   :  { %v352_v61 = vmax.f32 %v299_v59, 0.0  ;;  %v543_v62 = vadd.f32 %v1631_v25, %v542_v60 }
 0x177   :  { %v628_v63 = vmax.f32 %v543_v62, 0.0  ;;  %1304 = vmatmul.msk.f32.gmra.mxu1 %vm368_vm1, %v352_v61 }
 0x179   :  { %1326 = vmatmul.msk.f32.gmra.mxu2 %vm657_vm2, %v628_v63 }
 0x17a   :  { %v301_v0 = vpop.f32.mrf.mxu0 }
 0x17b   :  { %v302_v1 = vadd.f32 %v1527_v22, %v301_v0 }
 0x17c   :  { %v545_v2 = vpop.f32.mrf.mxu1 }
 0x17d   :  { %v353_v3 = vmax.f32 %v302_v1, 0.0  ;;  %v546_v4 = vadd.f32 %v1631_v25, %v545_v2 }
 0x17f   :  { %v629_v5 = vmax.f32 %v546_v4, 0.0  ;;  %1305 = vmatmul.msk.f32.gmra.mxu1 %vm368_vm1, %v353_v3 }
 0x181   :  { %1327 = vmatmul.msk.f32.gmra.mxu2 %vm657_vm2, %v629_v5 }
 0x182   :  { %v304_v6 = vpop.f32.mrf.mxu0 }
 0x183   :  { %v305_v7 = vadd.f32 %v1527_v22, %v304_v6 }
 0x184   :  { %v548_v8 = vpop.f32.mrf.mxu1 }
 0x185   :  { %v354_v9 = vmax.f32 %v305_v7, 0.0  ;;  %v549_v10 = vadd.f32 %v1631_v25, %v548_v8 }
 0x187   :  { %v630_v11 = vmax.f32 %v549_v10, 0.0  ;;  %1306 = vmatmul.msk.f32.gmra.mxu1 %vm368_vm1, %v354_v9 }
 0x189   :  { %1328 = vmatmul.msk.f32.gmra.mxu2 %vm657_vm2, %v630_v11 }
 0x18a   :  { %v307_v13 = vpop.f32.mrf.mxu0 }
 0x18b   :  { %v308_v14 = vadd.f32 %v1527_v22, %v307_v13 }
 0x18c   :  { %v551_v15 = vpop.f32.mrf.mxu1  ;;  %v789_v16 = vpop.f32.mrf.mxu2 }
 0x18d   :  { %v355_v17 = vmax.f32 %v308_v14, 0.0  ;;  %v552_v18 = vadd.f32 %v1631_v25, %v551_v15  ;;  %v790_v19 = vadd.f32 %v1740_v12, %v789_v16 }
 0x18f   :  { %v631_v20 = vmax.f32 %v552_v18, 0.0  ;;  %v903_v21 = vmax.f32 %v790_v19, 0.0  ;;  %1307 = vmatmul.msk.f32.gmra.mxu1 %vm368_vm1, %v355_v17 }
 0x191   :  { %1329 = vmatmul.msk.f32.gmra.mxu2 %vm657_vm2, %v631_v20  ;;  %1350 = vmatmul.msk.f32.vlgmr.msra.gmra.mxu3 %vm368_vm1, %v903_v21 }
 0x192   :  { %v310_v23 = vpop.f32.mrf.mxu0 }
 0x193   :  { %v311_v24 = vadd.f32 %v1527_v22, %v310_v23 }
 0x194   :  { %v554_v26 = vpop.f32.mrf.mxu1  ;;  %v792_v27 = vpop.f32.mrf.mxu2 }
 0x195   :  { %v356_v28 = vmax.f32 %v311_v24, 0.0  ;;  %v555_v29 = vadd.f32 %v1631_v25, %v554_v26  ;;  %v793_v30 = vadd.f32 %v1740_v12, %v792_v27 }
 0x197   :  { %v632_v31 = vmax.f32 %v555_v29, 0.0  ;;  %v904_v32 = vmax.f32 %v793_v30, 0.0  ;;  %1308 = vmatmul.msk.f32.gmra.mxu1 %vm368_vm1, %v356_v28 }
 0x199   :  { %1330 = vmatmul.msk.f32.gmra.mxu2 %vm657_vm2, %v632_v31  ;;  %1351 = vmatmul.msk.f32.gmra.mxu3 %vm368_vm1, %v904_v32 }
 0x19a   :  { %v313_v33 = vpop.f32.mrf.mxu0 }
 0x19b   :  { %v314_v34 = vadd.f32 %v1527_v22, %v313_v33 }
 0x19c   :  { %v557_v35 = vpop.f32.mrf.mxu1  ;;  %v795_v36 = vpop.f32.mrf.mxu2 }
 0x19d   :  { %v357_v37 = vmax.f32 %v314_v34, 0.0  ;;  %v558_v38 = vadd.f32 %v1631_v25, %v557_v35  ;;  %v796_v39 = vadd.f32 %v1740_v12, %v795_v36 }
 0x19f   :  { %v633_v40 = vmax.f32 %v558_v38, 0.0  ;;  %v905_v41 = vmax.f32 %v796_v39, 0.0  ;;  %1309 = vmatmul.msk.f32.gmra.mxu1 %vm368_vm1, %v357_v37 }
 0x1a1   :  { %1331 = vmatmul.msk.f32.gmra.mxu2 %vm657_vm2, %v633_v40  ;;  %1352 = vmatmul.msk.f32.gmra.mxu3 %vm368_vm1, %v905_v41 }
 0x1a2   :  { %v316_v42 = vpop.f32.mrf.mxu0 }
 0x1a3   :  { %v317_v43 = vadd.f32 %v1527_v22, %v316_v42 }
 0x1a4   :  { %v560_v44 = vpop.f32.mrf.mxu1  ;;  %v798_v45 = vpop.f32.mrf.mxu2 }
 0x1a5   :  { %v358_v46 = vmax.f32 %v317_v43, 0.0  ;;  %v561_v47 = vadd.f32 %v1631_v25, %v560_v44  ;;  %v799_v48 = vadd.f32 %v1740_v12, %v798_v45 }
 0x1a7   :  { %v634_v49 = vmax.f32 %v561_v47, 0.0  ;;  %v906_v50 = vmax.f32 %v799_v48, 0.0  ;;  %1310 = vmatmul.msk.f32.gmra.mxu1 %vm368_vm1, %v358_v46 }
 0x1a9   :  { %1332 = vmatmul.msk.f32.gmra.mxu2 %vm657_vm2, %v634_v49  ;;  %1353 = vmatmul.msk.f32.gmra.mxu3 %vm368_vm1, %v906_v50 }
 0x1aa   :  { %v319_v51 = vpop.f32.mrf.mxu0 }
 0x1ab   :  { %v320_v52 = vadd.f32 %v1527_v22, %v319_v51 }
 0x1ac   :  { %v563_v53 = vpop.f32.mrf.mxu1  ;;  %v801_v54 = vpop.f32.mrf.mxu2 }
 0x1ad   :  { %v359_v55 = vmax.f32 %v320_v52, 0.0  ;;  %v564_v56 = vadd.f32 %v1631_v25, %v563_v53  ;;  %v802_v57 = vadd.f32 %v1740_v12, %v801_v54 }
 0x1af   :  { %v635_v58 = vmax.f32 %v564_v56, 0.0  ;;  %v907_v59 = vmax.f32 %v802_v57, 0.0  ;;  %1311 = vmatmul.msk.f32.gmra.mxu1 %vm368_vm1, %v359_v55 }
 0x1b1   :  { %1333 = vmatmul.msk.f32.gmra.mxu2 %vm657_vm2, %v635_v58  ;;  %1354 = vmatmul.msk.f32.gmra.mxu3 %vm368_vm1, %v907_v59 }
 0x1b4   :  { %v566_v60 = vpop.f32.mrf.mxu1  ;;  %v804_v61 = vpop.f32.mrf.mxu2 }
 0x1b5   :  { %v567_v62 = vadd.f32 %v1631_v25, %v566_v60  ;;  %v805_v22 = vadd.f32 %v1740_v12, %v804_v61 }
 0x1b7   :  { %v636_v63 = vmax.f32 %v567_v62, 0.0  ;;  %v908_v0 = vmax.f32 %v805_v22, 0.0 }
 0x1b9   :  { %1334 = vmatmul.msk.f32.gmra.mxu2 %vm657_vm2, %v636_v63  ;;  %1355 = vmatmul.msk.f32.gmra.mxu3 %vm368_vm1, %v908_v0 }
 0x1bc   :  { %v569_v1 = vpop.f32.mrf.mxu1  ;;  %v807_v2 = vpop.f32.mrf.mxu2 }
 0x1bd   :  { %v570_v3 = vadd.f32 %v1631_v25, %v569_v1  ;;  %v808_v4 = vadd.f32 %v1740_v12, %v807_v2 }
 0x1bf   :  { %v637_v5 = vmax.f32 %v570_v3, 0.0  ;;  %v909_v6 = vmax.f32 %v808_v4, 0.0 }
 0x1c1   :  { %1335 = vmatmul.msk.f32.gmra.mxu2 %vm657_vm2, %v637_v5  ;;  %1356 = vmatmul.msk.f32.gmra.mxu3 %vm368_vm1, %v909_v6  ;;  %v1823_v5 = vld [vmem:[%s2073_s8] ss:$0 sm:$0xff] }
 0x1c4   :  { %v572_v7 = vpop.f32.mrf.mxu1  ;;  %v810_v8 = vpop.f32.mrf.mxu2 }
 0x1c5   :  { %v573_v9 = vadd.f32 %v1631_v25, %v572_v7  ;;  %v811_v10 = vadd.f32 %v1740_v12, %v810_v8 }
 0x1c7   :  { %v638_v11 = vmax.f32 %v573_v9, 0.0  ;;  %v910_v13 = vmax.f32 %v811_v10, 0.0 }
 0x1c9   :  { %1336 = vmatmul.msk.f32.gmra.mxu2 %vm657_vm2, %v638_v11  ;;  %1357 = vmatmul.msk.f32.gmra.mxu3 %vm368_vm1, %v910_v13 }
 0x1cc   :  { %v575_v14 = vpop.f32.mrf.mxu1  ;;  %v813_v15 = vpop.f32.mrf.mxu2 }
 0x1cd   :  { %v576_v16 = vadd.f32 %v1631_v25, %v575_v14  ;;  %v814_v17 = vadd.f32 %v1740_v12, %v813_v15 }
 0x1cf   :  { %v639_v18 = vmax.f32 %v576_v16, 0.0  ;;  %v911_v19 = vmax.f32 %v814_v17, 0.0 }
 0x1d1   :  { %1337 = vmatmul.msk.f32.gmra.mxu2 %vm657_vm2, %v639_v18  ;;  %1358 = vmatmul.msk.f32.gmra.mxu3 %vm368_vm1, %v911_v19 }
 0x1d4   :  { %v578_v20 = vpop.f32.mrf.mxu1  ;;  %v816_v21 = vpop.f32.mrf.mxu2 }
 0x1d5   :  { %v579_v23 = vadd.f32 %v1631_v25, %v578_v20  ;;  %v817_v24 = vadd.f32 %v1740_v12, %v816_v21 }
 0x1d7   :  { %v640_v26 = vmax.f32 %v579_v23, 0.0  ;;  %v912_v27 = vmax.f32 %v817_v24, 0.0 }
 0x1d9   :  { %1338 = vmatmul.msk.f32.gmra.mxu2 %vm657_vm2, %v640_v26  ;;  %1359 = vmatmul.msk.f32.gmra.mxu3 %vm368_vm1, %v912_v27 }
 0x1dc   :  { %v581_v28 = vpop.f32.mrf.mxu1  ;;  %v819_v29 = vpop.f32.mrf.mxu2 }
 0x1dd   :  { %v582_v30 = vadd.f32 %v1631_v25, %v581_v28  ;;  %v820_v31 = vadd.f32 %v1740_v12, %v819_v29 }
 0x1df   :  { %v641_v32 = vmax.f32 %v582_v30, 0.0  ;;  %v913_v33 = vmax.f32 %v820_v31, 0.0 }
 0x1e1   :  { %1339 = vmatmul.msk.f32.gmra.mxu2 %vm657_vm2, %v641_v32  ;;  %1360 = vmatmul.msk.f32.gmra.mxu3 %vm368_vm1, %v913_v33 }
 0x1e4   :  { %v584_v34 = vpop.f32.mrf.mxu1  ;;  %v822_v35 = vpop.f32.mrf.mxu2 }
 0x1e5   :  { %v585_v36 = vadd.f32 %v1631_v25, %v584_v34  ;;  %v823_v37 = vadd.f32 %v1740_v12, %v822_v35 }
 0x1e7   :  { %v642_v38 = vmax.f32 %v585_v36, 0.0  ;;  %v914_v39 = vmax.f32 %v823_v37, 0.0 }
 0x1e9   :  { %1340 = vmatmul.msk.f32.gmra.mxu2 %vm657_vm2, %v642_v38  ;;  %1361 = vmatmul.msk.f32.gmra.mxu3 %vm368_vm1, %v914_v39 }
 0x1ec   :  { %v587_v40 = vpop.f32.mrf.mxu1  ;;  %v825_v41 = vpop.f32.mrf.mxu2 }
 0x1ed   :  { %v588_v42 = vadd.f32 %v1631_v25, %v587_v40  ;;  %v826_v43 = vadd.f32 %v1740_v12, %v825_v41 }
 0x1ef   :  { %v643_v44 = vmax.f32 %v588_v42, 0.0  ;;  %v915_v45 = vmax.f32 %v826_v43, 0.0 }
 0x1f1   :  { %1341 = vmatmul.msk.f32.gmra.mxu2 %vm657_vm2, %v643_v44  ;;  %1362 = vmatmul.msk.f32.gmra.mxu3 %vm368_vm1, %v915_v45 }
 0x1f4   :  { %v590_v46 = vpop.f32.mrf.mxu1  ;;  %v828_v47 = vpop.f32.mrf.mxu2 }
 0x1f5   :  { %v591_v48 = vadd.f32 %v1631_v25, %v590_v46  ;;  %v829_v49 = vadd.f32 %v1740_v12, %v828_v47 }
 0x1f7   :  { %v644_v50 = vmax.f32 %v591_v48, 0.0  ;;  %v916_v51 = vmax.f32 %v829_v49, 0.0 }
 0x1f9   :  { %1342 = vmatmul.msk.f32.gmra.mxu2 %vm657_vm2, %v644_v50  ;;  %1363 = vmatmul.msk.f32.gmra.mxu3 %vm368_vm1, %v916_v51 }
 0x1fc   :  { %v593_v52 = vpop.f32.mrf.mxu1  ;;  %v831_v53 = vpop.f32.mrf.mxu2 }
 0x1fd   :  { %v594_v54 = vadd.f32 %v1631_v25, %v593_v52  ;;  %v832_v55 = vadd.f32 %v1740_v12, %v831_v53 }
 0x1ff   :  { %v645_v56 = vmax.f32 %v594_v54, 0.0  ;;  %v917_v57 = vmax.f32 %v832_v55, 0.0 }
 0x201   :  { %1343 = vmatmul.msk.f32.gmra.mxu2 %vm657_vm2, %v645_v56  ;;  %1364 = vmatmul.msk.f32.gmra.mxu3 %vm368_vm1, %v917_v57 }
 0x204   :  { %v596_v58 = vpop.f32.mrf.mxu1  ;;  %v834_v59 = vpop.f32.mrf.mxu2 }
 0x205   :  { %v597_v60 = vadd.f32 %v1631_v25, %v596_v58  ;;  %v835_v61 = vadd.f32 %v1740_v12, %v834_v59 }
 0x207   :  { %v646_v62 = vmax.f32 %v597_v60, 0.0  ;;  %v918_v22 = vmax.f32 %v835_v61, 0.0 }
 0x209   :  { %1344 = vmatmul.msk.f32.gmra.mxu2 %vm657_vm2, %v646_v62  ;;  %1365 = vmatmul.msk.f32.gmra.mxu3 %vm368_vm1, %v918_v22 }
 0x20c   :  { %v599_v63 = vpop.f32.mrf.mxu1  ;;  %v837_v0 = vpop.f32.mrf.mxu2 }
 0x20d   :  { %v600_v1 = vadd.f32 %v1631_v25, %v599_v63  ;;  %v838_v2 = vadd.f32 %v1740_v12, %v837_v0 }
 0x20f   :  { %v647_v3 = vmax.f32 %v600_v1, 0.0  ;;  %v919_v4 = vmax.f32 %v838_v2, 0.0 }
 0x211   :  { %1345 = vmatmul.msk.f32.gmra.mxu2 %vm657_vm2, %v647_v3  ;;  %1366 = vmatmul.msk.f32.gmra.mxu3 %vm368_vm1, %v919_v4 }
 0x214   :  { %v602_v6 = vpop.f32.mrf.mxu1  ;;  %v840_v7 = vpop.f32.mrf.mxu2 }
 0x215   :  { %v603_v8 = vadd.f32 %v1631_v25, %v602_v6  ;;  %v841_v9 = vadd.f32 %v1740_v12, %v840_v7  ;;  %v1080_v10 = vpop.f32.mrf.mxu3 }
 0x216   :  { %v1081_v11 = vadd.f32 %v1823_v5, %v1080_v10 }
 0x217   :  { %v648_v13 = vmax.f32 %v603_v8, 0.0  ;;  %v920_v14 = vmax.f32 %v841_v9, 0.0 }
 0x218   :  { %1194 = vst.msk [vmem:[%s2074_s9] sm:$0xff] %vm76_vm0, %v1081_v11 }
 0x219   :  { %1346 = vmatmul.msk.f32.gmra.mxu2 %vm657_vm2, %v648_v13  ;;  %1367 = vmatmul.msk.f32.gmra.mxu3 %vm368_vm1, %v920_v14 }
 0x21c   :  { %v605_v15 = vpop.f32.mrf.mxu1  ;;  %v843_v16 = vpop.f32.mrf.mxu2 }
 0x21d   :  { %v606_v17 = vadd.f32 %v1631_v25, %v605_v15  ;;  %v844_v18 = vadd.f32 %v1740_v12, %v843_v16  ;;  %v1083_v19 = vpop.f32.mrf.mxu3 }
 0x21e   :  { %v1084_v20 = vadd.f32 %v1823_v5, %v1083_v19 }
 0x21f   :  { %v649_v21 = vmax.f32 %v606_v17, 0.0  ;;  %v921_v23 = vmax.f32 %v844_v18, 0.0 }
 0x220   :  { %1195 = vst.msk [vmem:[%s2074_s9 + $0x8] sm:$0xff] %vm76_vm0, %v1084_v20 }
 0x221   :  { %1347 = vmatmul.msk.f32.gmra.mxu2 %vm657_vm2, %v649_v21  ;;  %1368 = vmatmul.msk.f32.gmra.mxu3 %vm368_vm1, %v921_v23 }
 0x224   :  { %v608_v24 = vpop.f32.mrf.mxu1  ;;  %v846_v26 = vpop.f32.mrf.mxu2 }
 0x225   :  { %v609_v27 = vadd.f32 %v1631_v25, %v608_v24  ;;  %v847_v28 = vadd.f32 %v1740_v12, %v846_v26  ;;  %v1086_v29 = vpop.f32.mrf.mxu3 }
 0x226   :  { %v1087_v30 = vadd.f32 %v1823_v5, %v1086_v29 }
 0x227   :  { %v650_v31 = vmax.f32 %v609_v27, 0.0  ;;  %v922_v32 = vmax.f32 %v847_v28, 0.0 }
 0x228   :  { %1196 = vst.msk [vmem:[%s2074_s9 + $0x10] sm:$0xff] %vm76_vm0, %v1087_v30 }
 0x229   :  { %1348 = vmatmul.msk.f32.gmra.mxu2 %vm657_vm2, %v650_v31  ;;  %1369 = vmatmul.msk.f32.gmra.mxu3 %vm368_vm1, %v922_v32 }
 0x22c   :  { %v611_v33 = vpop.f32.mrf.mxu1  ;;  %v849_v34 = vpop.f32.mrf.mxu2 }
 0x22d   :  { %v612_v35 = vadd.f32 %v1631_v25, %v611_v33  ;;  %v850_v36 = vadd.f32 %v1740_v12, %v849_v34  ;;  %v1089_v37 = vpop.f32.mrf.mxu3 }
 0x22e   :  { %v1090_v38 = vadd.f32 %v1823_v5, %v1089_v37 }
 0x22f   :  { %v651_v39 = vmax.f32 %v612_v35, 0.0  ;;  %v923_v40 = vmax.f32 %v850_v36, 0.0 }
 0x230   :  { %1197 = vst.msk [vmem:[%s2074_s9 + $0x18] sm:$0xff] %vm76_vm0, %v1090_v38 }
 0x231   :  { %1349 = vmatmul.msk.f32.gmra.mxu2 %vm657_vm2, %v651_v39  ;;  %1370 = vmatmul.msk.f32.gmra.mxu3 %vm368_vm1, %v923_v40 }
 0x234   :  { %v852_v41 = vpop.f32.mrf.mxu2 }
 0x235   :  { %v853_v42 = vadd.f32 %v1740_v12, %v852_v41  ;;  %v1092_v25 = vpop.f32.mrf.mxu3 }
 0x236   :  { %v1093_v43 = vadd.f32 %v1823_v5, %v1092_v25 }
 0x237   :  { %v924_v44 = vmax.f32 %v853_v42, 0.0 }
 0x238   :  { %1198 = vst.msk [vmem:[%s2074_s9 + $0x20] sm:$0xff] %vm76_vm0, %v1093_v43 }
 0x239   :  { %1371 = vmatmul.msk.f32.gmra.mxu3 %vm368_vm1, %v924_v44 }
 0x23c   :  { %v855_v45 = vpop.f32.mrf.mxu2 }
 0x23d   :  { %v856_v46 = vadd.f32 %v1740_v12, %v855_v45  ;;  %v1095_v47 = vpop.f32.mrf.mxu3 }
 0x23e   :  { %v1096_v48 = vadd.f32 %v1823_v5, %v1095_v47 }
 0x23f   :  { %v925_v49 = vmax.f32 %v856_v46, 0.0 }
 0x240   :  { %1199 = vst.msk [vmem:[%s2074_s9 + $0x28] sm:$0xff] %vm76_vm0, %v1096_v48 }
 0x241   :  { %1372 = vmatmul.msk.f32.gmra.mxu3 %vm368_vm1, %v925_v49 }
 0x244   :  { %v858_v50 = vpop.f32.mrf.mxu2 }
 0x245   :  { %v859_v51 = vadd.f32 %v1740_v12, %v858_v50  ;;  %v1098_v52 = vpop.f32.mrf.mxu3 }
 0x246   :  { %v1099_v53 = vadd.f32 %v1823_v5, %v1098_v52 }
 0x247   :  { %v926_v54 = vmax.f32 %v859_v51, 0.0 }
 0x248   :  { %1200 = vst.msk [vmem:[%s2074_s9 + $0x30] sm:$0xff] %vm76_vm0, %v1099_v53 }
 0x249   :  { %1373 = vmatmul.msk.f32.gmra.mxu3 %vm368_vm1, %v926_v54 }
 0x24c   :  { %v861_v55 = vpop.f32.mrf.mxu2 }
 0x24d   :  { %v862_v56 = vadd.f32 %v1740_v12, %v861_v55  ;;  %v1101_v57 = vpop.f32.mrf.mxu3 }
 0x24e   :  { %v1102_v58 = vadd.f32 %v1823_v5, %v1101_v57 }
 0x24f   :  { %v927_v59 = vmax.f32 %v862_v56, 0.0 }
 0x250   :  { %1201 = vst.msk [vmem:[%s2074_s9 + $0x38] sm:$0xff] %vm76_vm0, %v1102_v58 }
 0x251   :  { %1374 = vmatmul.msk.f32.gmra.mxu3 %vm368_vm1, %v927_v59 }
 0x254   :  { %v864_v60 = vpop.f32.mrf.mxu2 }
 0x255   :  { %v865_v61 = vadd.f32 %v1740_v12, %v864_v60  ;;  %v1104_v62 = vpop.f32.mrf.mxu3 }
 0x256   :  { %v1105_v22 = vadd.f32 %v1823_v5, %v1104_v62 }
 0x257   :  { %v928_v63 = vmax.f32 %v865_v61, 0.0 }
 0x258   :  { %1202 = vst.msk [vmem:[%s2074_s9 + $0x40] sm:$0xff] %vm76_vm0, %v1105_v22 }
 0x259   :  { %1375 = vmatmul.msk.f32.gmra.mxu3 %vm368_vm1, %v928_v63 }
 0x25c   :  { %v867_v0 = vpop.f32.mrf.mxu2 }
 0x25d   :  { %v868_v1 = vadd.f32 %v1740_v12, %v867_v0  ;;  %v1107_v2 = vpop.f32.mrf.mxu3 }
 0x25e   :  { %v1108_v3 = vadd.f32 %v1823_v5, %v1107_v2 }
 0x25f   :  { %v929_v4 = vmax.f32 %v868_v1, 0.0 }
 0x260   :  { %1203 = vst.msk [vmem:[%s2074_s9 + $0x48] sm:$0xff] %vm76_vm0, %v1108_v3 }
 0x261   :  { %1376 = vmatmul.msk.f32.gmra.mxu3 %vm368_vm1, %v929_v4 }
 0x264   :  { %v870_v6 = vpop.f32.mrf.mxu2 }
 0x265   :  { %v871_v7 = vadd.f32 %v1740_v12, %v870_v6  ;;  %v1110_v8 = vpop.f32.mrf.mxu3 }
 0x266   :  { %v1111_v9 = vadd.f32 %v1823_v5, %v1110_v8 }
 0x267   :  { %v930_v10 = vmax.f32 %v871_v7, 0.0 }
 0x268   :  { %1204 = vst.msk [vmem:[%s2074_s9 + $0x50] sm:$0xff] %vm76_vm0, %v1111_v9 }
 0x269   :  { %1377 = vmatmul.msk.f32.gmra.mxu3 %vm368_vm1, %v930_v10 }
 0x26c   :  { %v873_v11 = vpop.f32.mrf.mxu2 }
 0x26d   :  { %v874_v13 = vadd.f32 %v1740_v12, %v873_v11  ;;  %v1113_v14 = vpop.f32.mrf.mxu3 }
 0x26e   :  { %v1114_v15 = vadd.f32 %v1823_v5, %v1113_v14 }
 0x26f   :  { %v931_v16 = vmax.f32 %v874_v13, 0.0 }
 0x270   :  { %1205 = vst.msk [vmem:[%s2074_s9 + $0x58] sm:$0xff] %vm76_vm0, %v1114_v15 }
 0x271   :  { %1378 = vmatmul.msk.f32.gmra.mxu3 %vm368_vm1, %v931_v16 }
 0x274   :  { %v876_v17 = vpop.f32.mrf.mxu2 }
 0x275   :  { %v877_v18 = vadd.f32 %v1740_v12, %v876_v17  ;;  %v1116_v19 = vpop.f32.mrf.mxu3 }
 0x276   :  { %v1117_v20 = vadd.f32 %v1823_v5, %v1116_v19 }
 0x277   :  { %v932_v21 = vmax.f32 %v877_v18, 0.0 }
 0x278   :  { %1206 = vst.msk [vmem:[%s2074_s9 + $0x60] sm:$0xff] %vm76_vm0, %v1117_v20 }
 0x279   :  { %1379 = vmatmul.msk.f32.gmra.mxu3 %vm368_vm1, %v932_v21 }
 0x27c   :  { %v879_v23 = vpop.f32.mrf.mxu2 }
 0x27d   :  { %v880_v24 = vadd.f32 %v1740_v12, %v879_v23  ;;  %v1119_v26 = vpop.f32.mrf.mxu3 }
 0x27e   :  { %v1120_v27 = vadd.f32 %v1823_v5, %v1119_v26 }
 0x27f   :  { %v933_v28 = vmax.f32 %v880_v24, 0.0 }
 0x280   :  { %1207 = vst.msk [vmem:[%s2074_s9 + $0x68] sm:$0xff] %vm76_vm0, %v1120_v27 }
 0x281   :  { %1380 = vmatmul.msk.f32.gmra.mxu3 %vm368_vm1, %v933_v28 }
 0x284   :  { %v882_v29 = vpop.f32.mrf.mxu2 }
 0x285   :  { %v883_v30 = vadd.f32 %v1740_v12, %v882_v29  ;;  %v1122_v31 = vpop.f32.mrf.mxu3 }
 0x286   :  { %v1123_v32 = vadd.f32 %v1823_v5, %v1122_v31 }
 0x287   :  { %v934_v33 = vmax.f32 %v883_v30, 0.0 }
 0x288   :  { %1208 = vst.msk [vmem:[%s2074_s9 + $0x70] sm:$0xff] %vm76_vm0, %v1123_v32 }
 0x289   :  { %1381 = vmatmul.msk.f32.gmra.mxu3 %vm368_vm1, %v934_v33 }
 0x28c   :  { %v885_v34 = vpop.f32.mrf.mxu2 }
 0x28d   :  { %v886_v35 = vadd.f32 %v1740_v12, %v885_v34  ;;  %v1125_v36 = vpop.f32.mrf.mxu3 }
 0x28e   :  { %v1126_v37 = vadd.f32 %v1823_v5, %v1125_v36 }
 0x28f   :  { %v935_v38 = vmax.f32 %v886_v35, 0.0 }
 0x290   :  { %1209 = vst.msk [vmem:[%s2074_s9 + $0x78] sm:$0xff] %vm76_vm0, %v1126_v37 }
 0x291   :  { %1382 = vmatmul.msk.f32.gmra.mxu3 %vm368_vm1, %v935_v38 }
 0x294   :  { %v888_v39 = vpop.f32.mrf.mxu2 }
 0x295   :  { %v889_v40 = vadd.f32 %v1740_v12, %v888_v39  ;;  %v1128_v41 = vpop.f32.mrf.mxu3 }
 0x296   :  { %v1129_v42 = vadd.f32 %v1823_v5, %v1128_v41 }
 0x297   :  { %v936_v25 = vmax.f32 %v889_v40, 0.0 }
 0x298   :  { %1210 = vst.msk [vmem:[%s2074_s9 + $0x80] sm:$0xff] %vm76_vm0, %v1129_v42 }
 0x299   :  { %1383 = vmatmul.msk.f32.gmra.mxu3 %vm368_vm1, %v936_v25 }
 0x29c   :  { %v891_v43 = vpop.f32.mrf.mxu2 }
 0x29d   :  { %v892_v44 = vadd.f32 %v1740_v12, %v891_v43  ;;  %v1131_v45 = vpop.f32.mrf.mxu3 }
 0x29e   :  { %v1132_v46 = vadd.f32 %v1823_v5, %v1131_v45 }
 0x29f   :  { %v937_v47 = vmax.f32 %v892_v44, 0.0 }
 0x2a0   :  { %1211 = vst.msk [vmem:[%s2074_s9 + $0x88] sm:$0xff] %vm76_vm0, %v1132_v46 }
 0x2a1   :  { %1384 = vmatmul.msk.f32.gmra.mxu3 %vm368_vm1, %v937_v47 }
 0x2a4   :  { %v894_v48 = vpop.f32.mrf.mxu2 }
 0x2a5   :  { %v895_v49 = vadd.f32 %v1740_v12, %v894_v48  ;;  %v1134_v50 = vpop.f32.mrf.mxu3 }
 0x2a6   :  { %v1135_v51 = vadd.f32 %v1823_v5, %v1134_v50 }
 0x2a7   :  { %v938_v52 = vmax.f32 %v895_v49, 0.0 }
 0x2a8   :  { %1212 = vst.msk [vmem:[%s2074_s9 + $0x90] sm:$0xff] %vm76_vm0, %v1135_v51 }
 0x2a9   :  { %1385 = vmatmul.msk.f32.gmra.mxu3 %vm368_vm1, %v938_v52 }
 0x2ac   :  { %v897_v53 = vpop.f32.mrf.mxu2 }
 0x2ad   :  { %v898_v54 = vadd.f32 %v1740_v12, %v897_v53  ;;  %v1137_v55 = vpop.f32.mrf.mxu3 }
 0x2ae   :  { %v1138_v56 = vadd.f32 %v1823_v5, %v1137_v55 }
 0x2af   :  { %v939_v57 = vmax.f32 %v898_v54, 0.0 }
 0x2b0   :  { %1213 = vst.msk [vmem:[%s2074_s9 + $0x98] sm:$0xff] %vm76_vm0, %v1138_v56 }
 0x2b1   :  { %1386 = vmatmul.msk.f32.gmra.mxu3 %vm368_vm1, %v939_v57 }
 0x2b4   :  { %v900_v58 = vpop.f32.mrf.mxu2 }
 0x2b5   :  { %v901_v59 = vadd.f32 %v1740_v12, %v900_v58  ;;  %v1140_v60 = vpop.f32.mrf.mxu3 }
 0x2b6   :  { %v1141_v61 = vadd.f32 %v1823_v5, %v1140_v60 }
 0x2b7   :  { %v940_v62 = vmax.f32 %v901_v59, 0.0 }
 0x2b8   :  { %1214 = vst.msk [vmem:[%s2074_s9 + $0xa0] sm:$0xff] %vm76_vm0, %v1141_v61 }
 0x2b9   :  { %1387 = vmatmul.msk.f32.gmra.mxu3 %vm368_vm1, %v940_v62 }
 0x2bd   :  { %v1143_v22 = vpop.f32.mrf.mxu3 }
 0x2be   :  { %v1144_v63 = vadd.f32 %v1823_v5, %v1143_v22 }
 0x2c0   :  { %1215 = vst.msk [vmem:[%s2074_s9 + $0xa8] sm:$0xff] %vm76_vm0, %v1144_v63 }
 0x2c5   :  { %v1146_v12 = vpop.f32.mrf.mxu3 }
 0x2c6   :  { %v1147_v0 = vadd.f32 %v1823_v5, %v1146_v12 }
 0x2c8   :  { %1216 = vst.msk [vmem:[%s2074_s9 + $0xb0] sm:$0xff] %vm76_vm0, %v1147_v0 }
 0x2cd   :  { %v1149_v1 = vpop.f32.mrf.mxu3 }
 0x2ce   :  { %v1150_v2 = vadd.f32 %v1823_v5, %v1149_v1 }
 0x2d0   :  { %1217 = vst.msk [vmem:[%s2074_s9 + $0xb8] sm:$0xff] %vm76_vm0, %v1150_v2 }
 0x2d5   :  { %v1152_v3 = vpop.f32.mrf.mxu3 }
 0x2d6   :  { %v1153_v4 = vadd.f32 %v1823_v5, %v1152_v3 }
 0x2d8   :  { %1218 = vst.msk [vmem:[%s2074_s9 + $0xc0] sm:$0xff] %vm76_vm0, %v1153_v4 }
 0x2dd   :  { %v1155_v6 = vpop.f32.mrf.mxu3 }
 0x2de   :  { %v1156_v7 = vadd.f32 %v1823_v5, %v1155_v6 }
 0x2e0   :  { %1219 = vst.msk [vmem:[%s2074_s9 + $0xc8] sm:$0xff] %vm76_vm0, %v1156_v7 }
 0x2e5   :  { %v1158_v8 = vpop.f32.mrf.mxu3 }
 0x2e6   :  { %v1159_v9 = vadd.f32 %v1823_v5, %v1158_v8 }
 0x2e8   :  { %1220 = vst.msk [vmem:[%s2074_s9 + $0xd0] sm:$0xff] %vm76_vm0, %v1159_v9 }
 0x2ed   :  { %v1161_v10 = vpop.f32.mrf.mxu3 }
 0x2ee   :  { %v1162_v11 = vadd.f32 %v1823_v5, %v1161_v10 }
 0x2f0   :  { %1221 = vst.msk [vmem:[%s2074_s9 + $0xd8] sm:$0xff] %vm76_vm0, %v1162_v11 }
 0x2f5   :  { %v1164_v13 = vpop.f32.mrf.mxu3 }
 0x2f6   :  { %v1165_v14 = vadd.f32 %v1823_v5, %v1164_v13 }
 0x2f8   :  { %1222 = vst.msk [vmem:[%s2074_s9 + $0xe0] sm:$0xff] %vm76_vm0, %v1165_v14 }
 0x2fd   :  { %v1167_v15 = vpop.f32.mrf.mxu3 }
 0x2fe   :  { %v1168_v16 = vadd.f32 %v1823_v5, %v1167_v15 }
 0x300   :  { %1223 = vst.msk [vmem:[%s2074_s9 + $0xe8] sm:$0xff] %vm76_vm0, %v1168_v16 }
 0x305   :  { %v1170_v17 = vpop.f32.mrf.mxu3 }
 0x306   :  { %v1171_v18 = vadd.f32 %v1823_v5, %v1170_v17 }
 0x308   :  { %1224 = vst.msk [vmem:[%s2074_s9 + $0xf0] sm:$0xff] %vm76_vm0, %v1171_v18 }
 0x30d   :  { %v1173_v19 = vpop.f32.mrf.mxu3 }
 0x30e   :  { %v1174_v20 = vadd.f32 %v1823_v5, %v1173_v19 }
 0x310   :  { %1225 = vst.msk [vmem:[%s2074_s9 + $0xf8] sm:$0xff] %vm76_vm0, %v1174_v20 }
 0x315   :  { %v1176_v21 = vpop.f32.mrf.mxu3 }
 0x316   :  { %v1177_v23 = vadd.f32 %v1823_v5, %v1176_v21 }
 0x318   :  { %1226 = vst.msk [vmem:[%s2074_s9 + $0x100] sm:$0xff] %vm76_vm0, %v1177_v23 }
 0x31d   :  { %v1179_v24 = vpop.f32.mrf.mxu3 }
 0x31e   :  { %v1180_v26 = vadd.f32 %v1823_v5, %v1179_v24 }
 0x320   :  { %1227 = vst.msk [vmem:[%s2074_s9 + $0x108] sm:$0xff] %vm76_vm0, %v1180_v26 }
 0x325   :  { %v1182_v27 = vpop.f32.mrf.mxu3 }
 0x326   :  { %v1183_v28 = vadd.f32 %v1823_v5, %v1182_v27 }
 0x328   :  { %1228 = vst.msk [vmem:[%s2074_s9 + $0x110] sm:$0xff] %vm76_vm0, %v1183_v28 }
 0x32d   :  { %v1185_v29 = vpop.f32.mrf.mxu3 }
 0x32e   :  { %v1186_v30 = vadd.f32 %v1823_v5, %v1185_v29 }
 0x330   :  { %1229 = vst.msk [vmem:[%s2074_s9 + $0x118] sm:$0xff] %vm76_vm0, %v1186_v30 }
 0x335   :  { %v1188_v31 = vpop.f32.mrf.mxu3 }
 0x336   :  { %v1189_v32 = vadd.f32 %v1823_v5, %v1188_v31 }
 0x338   :  { %1230 = vst.msk [vmem:[%s2074_s9 + $0x120] sm:$0xff] %vm76_vm0, %v1189_v32 }
 0x33d   :  { %v1191_v33 = vpop.f32.mrf.mxu3 }
 0x33e   :  { %v1192_v34 = vadd.f32 %v1823_v5, %v1191_v33 }
 0x340   :  { %1231 = vst.msk [vmem:[%s2074_s9 + $0x128] sm:$0xff] %vm76_vm0, %v1192_v34 }

</bundles_post_ra>
